<compile_context>
chip_gen: v5e
topology: v5e:2x2
jax: 0.10.0
libtpu: 0.0.40
codegen_flags: <defaults>
</compile_context>

<pallas_src>
import functools

import jax
import jax.numpy as jnp
from jax.experimental import pallas as pl
from jax.experimental.pallas import tpu as pltpu


def _round_up(x: int, m: int) -> int:
    return ((x + m - 1) // m) * m


def mlp_kernel(x_ref, w1_ref, b1_ref, w2_ref, b2_ref, w3_ref, b3_ref, o_ref):
    """One batch tile of the fused 3-layer MLP.

    Matmuls run with bf16 operands and f32 accumulation on the MXU; the
    bias-add / ReLU elementwise work stays in f32 on the VPU.
    """
    # Layer 1: x @ W1 + b1, ReLU
    h1 = jnp.dot(x_ref[...], w1_ref[...], preferred_element_type=jnp.float32)
    h1 = jnp.maximum(h1 + b1_ref[...], 0.0)          # b1 is (1, H) -> broadcasts

    # Layer 2: h1 @ W2 + b2, ReLU  (cast activation to matmul dtype only)
    h2 = jnp.dot(h1.astype(w2_ref.dtype), w2_ref[...],
                 preferred_element_type=jnp.float32)
    h2 = jnp.maximum(h2 + b2_ref[...], 0.0)

    # Layer 3: h2 @ W3 + b3 (logits, no activation). W3/b3 are zero-padded to a
    # lane-dense (multiple-of-128) column count by the wrapper.
    out = jnp.dot(h2.astype(w3_ref.dtype), w3_ref[...],
                  preferred_element_type=jnp.float32)
    o_ref[...] = (out + b3_ref[...]).astype(o_ref.dtype)


def _vmem_budget_bytes(tb, in_size, hidden, c_pad):
    """Resident weights + double-buffered x/out tiles + intermediates, with slack."""
    bf16, f32 = 2, 4
    x_tile = tb * in_size * bf16
    out_tile = tb * c_pad * f32
    weights = (in_size * hidden + hidden * hidden + hidden * c_pad) * bf16
    biases = (hidden + hidden + c_pad) * f32
    acts = tb * hidden * (f32 + bf16) * 2 + tb * c_pad * f32
    total = 2 * (x_tile + out_tile) + 2 * (weights + biases) + acts
    total = int(total * 1.5) + (4 << 20)          # 50% slack + 4 MiB headroom
    return max(8 << 20, min(total, 48 << 20))     # clamp to a sane [8, 48] MiB


@functools.partial(jax.jit, static_argnames=("block_b",))
def neural_net_forward(x, w1, b1, w2, b2, w3, b3, *, block_b=256):
    """Forward pass of NeuralNet.

    x:  [B, input_size] f32
    w*: [in_features, out_features] (pre-transposed), b*: [1, out_features]
    Returns [B, num_classes] f32 logits.
    """
    B, in_size = x.shape
    hidden = w1.shape[1]
    num_classes = w3.shape[1]

    # --- lane-dense output: pad last layer to a multiple of 128 columns ----
    c_pad = _round_up(max(num_classes, 128), 128)
    if c_pad != num_classes:
        w3 = jnp.pad(w3, ((0, 0), (0, c_pad - num_classes)))
        b3 = jnp.pad(b3, ((0, 0), (0, c_pad - num_classes)))

    # --- batch tiling (tile rows multiple of 8 sublanes) --------------------
    tb = min(block_b, _round_up(B, 8))
    tb = _round_up(tb, 8)
    b_pad = _round_up(B, tb)
    if b_pad != B:
        x = jnp.pad(x, ((0, b_pad - B), (0, 0)))
    grid = (pl.cdiv(b_pad, tb),)

    # --- dtype plumbing: bf16 MXU operands, f32 biases/accumulation --------
    xc = x.astype(jnp.bfloat16)
    w1c = w1.astype(jnp.bfloat16)
    w2c = w2.astype(jnp.bfloat16)
    w3c = w3.astype(jnp.bfloat16)
    b1f = b1.astype(jnp.float32)
    b2f = b2.astype(jnp.float32)
    b3f = b3.astype(jnp.float32)

    out = pl.pallas_call(
        mlp_kernel,
        out_shape=jax.ShapeDtypeStruct((b_pad, c_pad), jnp.float32),
        grid_spec=pltpu.PrefetchScalarGridSpec(
            num_scalar_prefetch=0,
            grid=grid,
            in_specs=[
                # x: one batch tile per grid step (pipelined / double-buffered).
                pl.BlockSpec((tb, in_size), lambda i: (i, 0)),
                # Weights / biases: constant index_map -> fetched once, stay
                # resident in VMEM across all batch tiles.
                pl.BlockSpec((in_size, hidden), lambda i: (0, 0)),
                pl.BlockSpec((1, hidden), lambda i: (0, 0)),
                pl.BlockSpec((hidden, hidden), lambda i: (0, 0)),
                pl.BlockSpec((1, hidden), lambda i: (0, 0)),
                pl.BlockSpec((hidden, c_pad), lambda i: (0, 0)),
                pl.BlockSpec((1, c_pad), lambda i: (0, 0)),
            ],
            out_specs=pl.BlockSpec((tb, c_pad), lambda i: (i, 0)),
        ),
        compiler_params=pltpu.CompilerParams(
            dimension_semantics=("parallel",),   # batch tiles split across TCs (v7x)
            vmem_limit_bytes=_vmem_budget_bytes(tb, in_size, hidden, c_pad),
        ),
    )(xc, w1c, b1f, w2c, b2f, w3c, b3f)

    # Slice padded batch rows / padded logit columns back off.
    return out[:B, :num_classes]


def _init_linear(key, fan_in, fan_out):
    """Deterministic init mimicking nn.Linear's U(-1/sqrt(fan_in), 1/sqrt(fan_in)).
    Returns W [fan_in, fan_out] (pre-transposed) and b [1, fan_out]."""
    kw, kb = jax.random.split(key)
    bound = 1.0 / jnp.sqrt(fan_in)
    w = jax.random.uniform(kw, (fan_in, fan_out), jnp.float32, -bound, bound)
    b = jax.random.uniform(kb, (1, fan_out), jnp.float32, -bound, bound)
    return w, b


if __name__ == "__main__":
    # Small shapes consistent with NeuralNet(input_size, hidden_size, num_classes).
    batch = 64          # 2 grid steps with block_b=32 -> exercises the batch grid
    input_size = 32
    hidden_size = 64
    num_classes = 16

    key = jax.random.PRNGKey(0)
    kx, k1, k2, k3 = jax.random.split(key, 4)

    x = jax.random.normal(kx, (batch, input_size), jnp.float32)
    w1, b1 = _init_linear(k1, input_size, hidden_size)
    w2, b2 = _init_linear(k2, hidden_size, hidden_size)
    w3, b3 = _init_linear(k3, hidden_size, num_classes)

    out = neural_net_forward(x, w1, b1, w2, b2, w3, b3, block_b=32)
    jax.block_until_ready(out)
    assert out.shape == (batch, num_classes)

    # Reference with the same bf16-operand / f32-accumulate numerics.
    def dot32(a, w):
        return jnp.dot(a.astype(jnp.bfloat16), w.astype(jnp.bfloat16),
                       preferred_element_type=jnp.float32)

    ref = jnp.maximum(dot32(x, w1) + b1, 0.0)
    ref = jnp.maximum(dot32(ref, w2) + b2, 0.0)
    ref = dot32(ref, w3) + b3
    assert jnp.allclose(out, ref, atol=2e-2, rtol=2e-2), "bf16-numerics mismatch"

    # Sanity check against the pure-f32 PyTorch-equivalent forward (loose
    # tolerance because the kernel intentionally uses bf16 MXU operands).
    ref32 = jnp.maximum(x @ w1 + b1, 0.0)
    ref32 = jnp.maximum(ref32 @ w2 + b2, 0.0)
    ref32 = ref32 @ w3 + b3
    assert jnp.allclose(out, ref32, atol=1e-1, rtol=1e-1), "f32 reference mismatch"

    print("KERNEL_OK")
</pallas_src>

<mosaic_0001>
module attributes {stable_mosaic.version = 11 : i64} {
  func.func @mlp_kernel(%arg0: i32, %arg1: memref<32x32xbf16, #tpu.memory_space<vmem>>, %arg2: memref<32x64xbf16, #tpu.memory_space<vmem>>, %arg3: memref<1x64xf32, #tpu.memory_space<vmem>>, %arg4: memref<64x64xbf16, #tpu.memory_space<vmem>>, %arg5: memref<1x64xf32, #tpu.memory_space<vmem>>, %arg6: memref<64x128xbf16, #tpu.memory_space<vmem>>, %arg7: memref<1x128xf32, #tpu.memory_space<vmem>>, %arg8: memref<32x128xf32, #tpu.memory_space<vmem>>) attributes {dimension_semantics = [#tpu.dimension_semantics<parallel>], iteration_bounds = array<i64: 2>, scalar_prefetch = 0 : i64, scratch_operands = 0 : i64, tpu.core_type = #tpu.core_type<tc>, window_params = [{transform_indices = @transform_0, window_bounds = array<i64: 32, 32>}, {pipeline_mode = #tpu.pipeline_mode<synchronous>, transform_indices = @transform_1, window_bounds = array<i64: 32, 64>}, {pipeline_mode = #tpu.pipeline_mode<synchronous>, transform_indices = @transform_2, window_bounds = array<i64: 1, 64>}, {pipeline_mode = #tpu.pipeline_mode<synchronous>, transform_indices = @transform_3, window_bounds = array<i64: 64, 64>}, {pipeline_mode = #tpu.pipeline_mode<synchronous>, transform_indices = @transform_4, window_bounds = array<i64: 1, 64>}, {pipeline_mode = #tpu.pipeline_mode<synchronous>, transform_indices = @transform_5, window_bounds = array<i64: 64, 128>}, {pipeline_mode = #tpu.pipeline_mode<synchronous>, transform_indices = @transform_6, window_bounds = array<i64: 1, 128>}, {transform_indices = @transform_7, window_bounds = array<i64: 32, 128>}]} {
    %c0 = arith.constant 0 : index
    %c0_0 = arith.constant 0 : index
    %0 = vector.load %arg1[%c0, %c0_0] : memref<32x32xbf16, #tpu.memory_space<vmem>>, vector<32x32xbf16>
    %c0_1 = arith.constant 0 : index
    %c0_2 = arith.constant 0 : index
    %1 = vector.load %arg2[%c0_1, %c0_2] : memref<32x64xbf16, #tpu.memory_space<vmem>>, vector<32x64xbf16>
    %cst = arith.constant dense<0.000000e+00> : vector<32x64xf32>
    %2 = tpu.matmul %0, %1, %cst {dimension_numbers = #tpu.dot_dimension_numbers<[1], [0], [0], [1], [0, 0, 1, 1], [], []>} : vector<32x32xbf16>, vector<32x64xbf16>, vector<32x64xf32> -> vector<32x64xf32>
    %c0_3 = arith.constant 0 : index
    %c0_4 = arith.constant 0 : index
    %3 = vector.load %arg3[%c0_3, %c0_4] : memref<1x64xf32, #tpu.memory_space<vmem>>, vector<1x64xf32>
    %4 = vector.broadcast %3 : vector<1x64xf32> to vector<32x64xf32>
    %5 = arith.addf %2, %4 : vector<32x64xf32>
    %cst_5 = arith.constant 0.000000e+00 : f32
    %6 = vector.broadcast %cst_5 : f32 to vector<32x64xf32>
    %7 = arith.maximumf %5, %6 : vector<32x64xf32>
    %8 = arith.truncf %7 : vector<32x64xf32> to vector<32x64xbf16>
    %c0_6 = arith.constant 0 : index
    %c0_7 = arith.constant 0 : index
    %9 = vector.load %arg4[%c0_6, %c0_7] : memref<64x64xbf16, #tpu.memory_space<vmem>>, vector<64x64xbf16>
    %cst_8 = arith.constant dense<0.000000e+00> : vector<32x64xf32>
    %10 = tpu.matmul %8, %9, %cst_8 {dimension_numbers = #tpu.dot_dimension_numbers<[1], [0], [0], [1], [0, 0, 1, 1], [], []>} : vector<32x64xbf16>, vector<64x64xbf16>, vector<32x64xf32> -> vector<32x64xf32>
    %c0_9 = arith.constant 0 : index
    %c0_10 = arith.constant 0 : index
    %11 = vector.load %arg5[%c0_9, %c0_10] : memref<1x64xf32, #tpu.memory_space<vmem>>, vector<1x64xf32>
    %12 = vector.broadcast %11 : vector<1x64xf32> to vector<32x64xf32>
    %13 = arith.addf %10, %12 : vector<32x64xf32>
    %cst_11 = arith.constant 0.000000e+00 : f32
    %14 = vector.broadcast %cst_11 : f32 to vector<32x64xf32>
    %15 = arith.maximumf %13, %14 : vector<32x64xf32>
    %16 = arith.truncf %15 : vector<32x64xf32> to vector<32x64xbf16>
    %c0_12 = arith.constant 0 : index
    %c0_13 = arith.constant 0 : index
    %17 = vector.load %arg6[%c0_12, %c0_13] : memref<64x128xbf16, #tpu.memory_space<vmem>>, vector<64x128xbf16>
    %cst_14 = arith.constant dense<0.000000e+00> : vector<32x128xf32>
    %18 = tpu.matmul %16, %17, %cst_14 {dimension_numbers = #tpu.dot_dimension_numbers<[1], [0], [0], [1], [0, 0, 1, 1], [], []>} : vector<32x64xbf16>, vector<64x128xbf16>, vector<32x128xf32> -> vector<32x128xf32>
    %c0_15 = arith.constant 0 : index
    %c0_16 = arith.constant 0 : index
    %19 = vector.load %arg7[%c0_15, %c0_16] : memref<1x128xf32, #tpu.memory_space<vmem>>, vector<1x128xf32>
    %20 = vector.broadcast %19 : vector<1x128xf32> to vector<32x128xf32>
    %21 = arith.addf %18, %20 : vector<32x128xf32>
    %c0_17 = arith.constant 0 : index
    %c0_18 = arith.constant 0 : index
    %22 = vector.load %arg8[%c0_17, %c0_18] : memref<32x128xf32, #tpu.memory_space<vmem>>, vector<32x128xf32>
    tpu.vector_store %arg8[%c0_17, %c0_18], %21 {strides = array<i32>} : memref<32x128xf32, #tpu.memory_space<vmem>>, vector<32x128xf32>,
    return
  }
  func.func @transform_0(%arg0: i32) -> (i32, i32) {
    %c0_i32 = arith.constant 0 : i32
    %c0_i32_0 = arith.constant 0 : i32
    return %arg0, %c0_i32 : i32, i32
  }
  func.func @transform_1(%arg0: i32) -> (i32, i32) {
    %c0_i32 = arith.constant 0 : i32
    %c0_i32_0 = arith.constant 0 : i32
    %c0_i32_1 = arith.constant 0 : i32
    return %c0_i32, %c0_i32_0 : i32, i32
  }
  func.func @transform_2(%arg0: i32) -> (i32, i32) {
    %c0_i32 = arith.constant 0 : i32
    %c0_i32_0 = arith.constant 0 : i32
    %c0_i32_1 = arith.constant 0 : i32
    return %c0_i32, %c0_i32_0 : i32, i32
  }
  func.func @transform_3(%arg0: i32) -> (i32, i32) {
    %c0_i32 = arith.constant 0 : i32
    %c0_i32_0 = arith.constant 0 : i32
    %c0_i32_1 = arith.constant 0 : i32
    return %c0_i32, %c0_i32_0 : i32, i32
  }
  func.func @transform_4(%arg0: i32) -> (i32, i32) {
    %c0_i32 = arith.constant 0 : i32
    %c0_i32_0 = arith.constant 0 : i32
    %c0_i32_1 = arith.constant 0 : i32
    return %c0_i32, %c0_i32_0 : i32, i32
  }
  func.func @transform_5(%arg0: i32) -> (i32, i32) {
    %c0_i32 = arith.constant 0 : i32
    %c0_i32_0 = arith.constant 0 : i32
    %c0_i32_1 = arith.constant 0 : i32
    return %c0_i32, %c0_i32_0 : i32, i32
  }
  func.func @transform_6(%arg0: i32) -> (i32, i32) {
    %c0_i32 = arith.constant 0 : i32
    %c0_i32_0 = arith.constant 0 : i32
    %c0_i32_1 = arith.constant 0 : i32
    return %c0_i32, %c0_i32_0 : i32, i32
  }
  func.func @transform_7(%arg0: i32) -> (i32, i32) {
    %c0_i32 = arith.constant 0 : i32
    %c0_i32_0 = arith.constant 0 : i32
    return %arg0, %c0_i32 : i32, i32
  }
}

</mosaic_0001>

<bundles_post_ra>
// kernel: neural_net_forward.1
= control target key start
LH: loop header
LB: loop body
LE: loop exit
PB: predicated region body
PF: predicated region fallthrough
CT: control target
= control target key end

     0   :  { %s678_s24 = smov 0   ;;  %s742_s0 = inlined_call_operand.vmem [shape: bf16[64,32], index: 0, kind: input, shape index: {}]   ;;  %s743_s1 = inlined_call_operand.vmem [shape: bf16[32,64], index: 1, kind: input, shape index: {}]   ;;  %s744_s2 = inlined_call_operand.vmem [shape: f32[1,64], index: 2, kind: input, shape index: {}]   ;;  %s745_s3 = inlined_call_operand.vmem [shape: bf16[64,64], index: 3, kind: input, shape index: {}]   ;;  %s746_s4 = inlined_call_operand.vmem [shape: f32[1,64], index: 4, kind: input, shape index: {}]   ;;  %s747_s5 = inlined_call_operand.vmem [shape: bf16[64,128], index: 5, kind: input, shape index: {}]   ;;  %s748_s6 = inlined_call_operand.vmem [shape: f32[1,128], index: 6, kind: input, shape index: {}]   ;;  %s749_s7 = inlined_call_operand.vmem [shape: f32[64,128], index: 7, kind: output, shape index: {}]  }
   0x1 LB: > { %s538_s25 = sadd.s32 4294967295, %s636_s24   ;;  %p542_p0 = scmp.ge.s32.totalorder %s636_s24, 1  ;;  %s636_s24 = sphi %s678_s24, %s17_s24  }
   0x2   : > { %p238_p1 = scmp.lt.s32.totalorder %s636_s24, 3 }
   0x4   : > { %p239_p2 = pnand %p542_p0, %p238_p1 }
   0x5   : > { %s543_s28 = sshll.u32 (!%p239_p2), %s538_s25, 2 }
   0x6   : > { %242 = sbr.rel (%p239_p2) target bundleno = 464 (0x1d0), region = 48  ;;  %p271_p3 = scmp.lt.s32.totalorder (!%p239_p2), %s543_s28, 7 }
   0xb   : > { %v606_v0 = vld [vmem:[%s743_s1 + $0x8] sm:$0xff]  ;;  %v605_v1 = vld [vmem:[%s743_s1] sm:$0xff]  ;;  %s751_s28 = smov (!%p271_p3, %s543_s28), 7  ;;  %vm317_vm0 = vcmask 261120   ;;  %v610_v4 = vld [vmem:[%s745_s3 + $0x18] sm:$0xff]  ;;  %vm385_vm1 = vcmask 523264  }
   0xc   : > { %330 = vmatpush.bf16.msra.mxu0 %v606_v0  ;;  %s544_s8 = sshll.u32 %s751_s28, 2  ;;  %396 = vmatpush.bf16.msra.mxu1 %v610_v4  ;;  %v609_v5 = vld [vmem:[%s745_s3 + $0x10] sm:$0xff]  ;;  %v608_v6 = vld [vmem:[%s745_s3 + $0x8] sm:$0xff]  ;;  %v607_v7 = vld [vmem:[%s745_s3] sm:$0xff] }
   0xd   : > { %s274_s11 = scalar_lea.vmem %s742_s0, %s544_s8  ;;  %615 = vmatpush.bf16.msra.mxu3 %v610_v4  ;;  %v627_v9 = vld [vmem:[%s744_s2] ss:$0 sm:$0xff]  ;;  %v614_v23 = vld [vmem:[%s747_s5 + $0x18] sm:$0xff]  ;;  %v613_v24 = vld [vmem:[%s747_s5 + $0x10] sm:$0xff] }
   0xe   : > { %v603_v2 = vld [vmem:[%s274_s11] sm:$0xff]  ;;  %v604_v3 = vld [vmem:[%s274_s11 + $0x8] sm:$0xff]  ;;  %463 = vmatpush.bf16.msra.mxu2 %v614_v23  ;;  %s546_s11 = sshll.u32 %s751_s28, 3 }
   0xf   : > { %v612_v25 = vld [vmem:[%s747_s5 + $0x8] sm:$0xff]  ;;  %v611_v26 = vld [vmem:[%s747_s5] sm:$0xff]  ;;  %s280_s16 = scalar_lea.vmem %s749_s7, %s546_s11 }
  0x10   : > { %331 = vmatpush.bf16.msra.mxu0 %v605_v1  ;;  %397 = vmatpush.bf16.msra.mxu1 %v609_v5  ;;  %v628_v28 = vld [vmem:[%s746_s4] ss:$0 sm:$0xff] }
  0x11   : > { %616 = vmatpush.bf16.msra.mxu3 %v609_v5  ;;  %v629_v42 = vld [vmem:[%s748_s6] ss:$0 sm:$0xff] }
  0x12   : > { %464 = vmatpush.bf16.msra.mxu2 %v613_v24 }
  0x13   : > { %563 = vmatmul.msk.bf16.vlgmr.msra.gmra.mxu0 %vm317_vm0, %v603_v2 }
  0x14   : > { %398 = vmatpush.bf16.msra.mxu1 %v608_v6 }
  0x15   : > { %617 = vmatpush.bf16.msra.mxu3 %v608_v6 }
  0x16   : > { %465 = vmatpush.bf16.msra.mxu2 %v612_v25 }
  0x18   : > { %399 = vmatpush.bf16.msra.mxu1 %v607_v7 }
  0x19   : > { %618 = vmatpush.bf16.msra.mxu3 %v607_v7 }
  0x1a   : > { %466 = vmatpush.bf16.msra.mxu2 %v611_v26 }
  0x23   : > { %564 = vmatmul.msk.bf16.gmra.mxu0 %vm317_vm0, %v604_v3 }
  0x90   : > { %v333_v8 = vpop.f32.mrf.mxu0 }
  0x91   : > { %v334_v10 = vadd.f32 %v627_v9, %v333_v8 }
  0x93   : > { %v343_v13 = vmax.f32 %v334_v10, 0.0 }
  0x98   : > { %v335_v11 = vpop.f32.mrf.mxu0 }
  0x99   : > { %v336_v12 = vadd.f32 %v627_v9, %v335_v11 }
  0x9b   : > { %v344_v14 = vmax.f32 %v336_v12, 0.0 }
  0x9d   : > { %v347_v15 = vpack.c.bf16 %v344_v14, %v343_v13 }
  0x9f   : > { %581 = vmatmul.msk.bf16.vlgmr.msra.gmra.mxu1 %vm385_vm1, %v347_v15 }
  0xa0   : > { %v338_v16 = vpop.f32.mrf.mxu0 }
  0xa1   : > { %v339_v17 = vadd.f32 %v627_v9, %v338_v16 }
  0xa3   : > { %v345_v20 = vmax.f32 %v339_v17, 0.0 }
  0xa8   : > { %v340_v18 = vpop.f32.mrf.mxu0 }
  0xa9   : > { %v341_v19 = vadd.f32 %v627_v9, %v340_v18 }
  0xab   : > { %v346_v21 = vmax.f32 %v341_v19, 0.0 }
  0xad   : > { %v348_v22 = vpack.c.bf16 %v346_v21, %v345_v20 }
  0xaf   : > { %582 = vmatmul.msk.bf16.vlgmr.msra.gmra.mxu3 %vm385_vm1, %v348_v22 }
 0x11c   : > { %v401_v27 = vpop.f32.mrf.mxu1 }
 0x11d   : > { %v402_v29 = vadd.f32 %v628_v28, %v401_v27 }
 0x11f   : > { %v411_v32 = vmax.f32 %v402_v29, 0.0 }
 0x124   : > { %v403_v30 = vpop.f32.mrf.mxu1 }
 0x125   : > { %v404_v31 = vadd.f32 %v628_v28, %v403_v30 }
 0x127   : > { %v412_v33 = vmax.f32 %v404_v31, 0.0 }
 0x129   : > { %v415_v34 = vpack.c.bf16 %v412_v33, %v411_v32 }
 0x12b   : > { %599 = vmatmul.msk.bf16.vlgmr.msra.gmra.mxu2 %vm385_vm1, %v415_v34 }
 0x132   : > { %v406_v35 = vpop.f32.mrf.mxu3 }
 0x133   : > { %v407_v36 = vadd.f32 %v628_v28, %v406_v35 }
 0x135   : > { %v413_v39 = vmax.f32 %v407_v36, 0.0 }
 0x13a   : > { %v408_v37 = vpop.f32.mrf.mxu3 }
 0x13b   : > { %v409_v38 = vadd.f32 %v628_v28, %v408_v37 }
 0x13d   : > { %v414_v40 = vmax.f32 %v409_v38, 0.0 }
 0x13f   : > { %v416_v41 = vpack.c.bf16 %v414_v40, %v413_v39 }
 0x141   : > { %600 = vmatmul.msk.bf16.gmra.mxu2 %vm385_vm1, %v416_v41 }
 0x1ae   : > { %v468_v43 = vpop.f32.mrf.mxu2 }
 0x1af   : > { %v469_v44 = vadd.f32 %v629_v42, %v468_v43 }
 0x1b1   : > { %478 = vst [vmem:[%s280_s16] sm:$0xff] %v469_v44 }
 0x1b6   : > { %v470_v45 = vpop.f32.mrf.mxu2 }
 0x1b7   : > { %v471_v46 = vadd.f32 %v629_v42, %v470_v45 }
 0x1b9   : > { %479 = vst [vmem:[%s280_s16 + $0x8] sm:$0xff] %v471_v46 }
 0x1c4   : > { %v473_v47 = vpop.f32.mrf.mxu2 }
 0x1c5   : > { %v474_v48 = vadd.f32 %v629_v42, %v473_v47 }
 0x1c7   : > { %480 = vst [vmem:[%s280_s16 + $0x10] sm:$0xff] %v474_v48 }
 0x1cc   : > { %v475_v49 = vpop.f32.mrf.mxu2 }
 0x1cd   : > { %v476_v50 = vadd.f32 %v629_v42, %v475_v49 }
 0x1cf   : > { %481 = vst [vmem:[%s280_s16 + $0x18] sm:$0xff] %v476_v50 }
 0x1d0 PF: > { %s17_s24 = sadd.s32 1, %s636_s24  }
 0x1d1   : > { %p14_p4 = scmp.ge.s32.totalorder %s17_s24, 4  }
 0x1d3   :  { %16 = sbr.rel (!%p14_p4) target bundleno = 1 (0x1), region = 78 }

</bundles_post_ra>
